<compile_context>
chip_gen: v7x
topology: tpu7x:2x2x1
jax: 0.10.0
libtpu: 0.0.40
codegen_flags: <defaults>
</compile_context>

<pallas_src>
import functools
import math

import jax
import jax.numpy as jnp
from jax.experimental import pallas as pl
from jax.experimental.pallas import tpu as pltpu

LANE = 128
SUBLANE = 8            # f32 sublanes per vreg (accumulator granularity)


def _round_up(x, m):
    return -(-x // m) * m


@functools.lru_cache(maxsize=1)
def _tpu_defaults():
    """(num_splits, target_tile_bytes) for this host's TPU generation."""
    kind = ""
    try:
        kind = jax.devices()[0].device_kind.lower()
    except Exception:
        pass
    # Multi-TensorCore chips where a "parallel" grid axis shards across cores.
    multi_tc = any(tag in kind for tag in ("v7", "7x", "v5p", "v4"))
    target_bytes = (4 << 20) if ("v7" in kind or "7x" in kind) else (2 << 20)
    return (2 if multi_tc else 1), target_bytes


def _copy_free_2d_view(shape):
    """Pick a copy-free (contiguous-reshape) 2-D view (M, N) of a weight,
    preferring a lane-dense last dim (multiple of 128)."""
    n_total = math.prod(shape)
    if n_total % LANE == 0:
        return n_total // LANE, LANE
    best, best_key = None, None
    for k in range(1, len(shape)):
        m = math.prod(shape[:k])
        n = math.prod(shape[k:])
        lane_util = n / _round_up(n, LANE)
        key = (lane_util, min(n, 4096))
        if best_key is None or key > best_key:
            best, best_key = (m, n), key
    return best


def _sumsq_kernel(x_ref, o_ref, *, m_valid, needs_mask):
    """Accumulate the sublane-folded sum of squares of the current (tile_m, N)
    tile into the small resident (8, N) f32 output block (one per split)."""
    c = pl.program_id(0)            # split (parallel axis)
    i = pl.program_id(1)            # row-tile step within the split (reduction)
    steps = pl.num_programs(1)
    tile_m, n = x_ref.shape

    @pl.when(i == 0)
    def _init():
        o_ref[...] = jnp.zeros_like(o_ref)

    x = x_ref[...].astype(jnp.float32)   # native dtype stays in HBM; cast on VPU
    if needs_mask:
        # Only emitted when the grid over-covers the row range: zero the
        # unspecified padding rows of the (partial) last tile.
        row0 = (c * steps + i) * tile_m
        rows = jax.lax.broadcasted_iota(jnp.int32, (tile_m, n), 0) + row0
        x = jnp.where(rows < m_valid, x, 0.0)
    xsq = x * x
    # Fold sublane groups into the tiny accumulator (no (tile_m, N) output).
    o_ref[...] += jnp.sum(xsq.reshape(tile_m // SUBLANE, SUBLANE, n), axis=0)


def _weight_sumsq(w):
    """sum(w.astype(f32) ** 2) via one Pallas call streaming w directly from
    HBM in its native layout/dtype (no repack, no concatenation)."""
    splits, target_bytes = _tpu_defaults()
    shape = tuple(int(s) for s in w.shape)
    m, n = _copy_free_2d_view(shape)
    w2 = w.reshape(m, n)                       # contiguous reshape: no copy

    itemsize = w.dtype.itemsize
    sub = (8 * 4) // itemsize                  # sublane packing: 8 f32 / 16 bf16 / 32 int8
    rows_budget = max(sub, (target_bytes // (n * itemsize)) // sub * sub)
    rows_needed = _round_up(pl.cdiv(m, splits), sub)
    tile_m = max(sub, min(rows_budget, rows_needed))
    steps = pl.cdiv(m, splits * tile_m)
    # Never leave a fully out-of-range tile for a second split.
    if splits > 1 and (splits * steps - 1) * tile_m >= m:
        splits, steps = 1, pl.cdiv(m, tile_m)

    needs_mask = (splits * steps * tile_m) != m
    n_elems = m * n
    tile_bytes = tile_m * n * itemsize
    vmem_limit = int(min(48 << 20,
                         max(20 << 20,
                             2 * tile_bytes + 4 * tile_m * n * 4 + (4 << 20))))

    kernel = functools.partial(_sumsq_kernel, m_valid=m, needs_mask=needs_mask)
    partials = pl.pallas_call(
        kernel,
        out_shape=jax.ShapeDtypeStruct((splits * SUBLANE, n), jnp.float32),
        grid_spec=pltpu.PrefetchScalarGridSpec(
            num_scalar_prefetch=0,
            grid=(splits, steps),
            in_specs=[pl.BlockSpec((tile_m, n), lambda c, i: (c * steps + i, 0))],
            out_specs=pl.BlockSpec((SUBLANE, n), lambda c, i: (c, 0)),
        ),
        compiler_params=pltpu.CompilerParams(
            dimension_semantics=("parallel", "arbitrary"),
            vmem_limit_bytes=vmem_limit),
        cost_estimate=pl.CostEstimate(
            flops=2 * n_elems,
            transcendentals=0,
            bytes_accessed=n_elems * itemsize + splits * SUBLANE * n * 4),
    )(w2)
    # Tiny (splits*8, N) partial -> scalar reduce (trivial XLA op).
    return jnp.sum(partials)


@jax.jit
def _fused_l2(*weights):
    total = jnp.zeros((), jnp.float32)
    for w in weights:            # static Python loop; each weight read once from HBM
        total = total + _weight_sumsq(w)
    return total


class Regularization:
    """L2 (weight-decay) regularization over all 2-D / 4-D 'weight' params.

    Forward: lambda_ * sum_over_weights(sum(w ** 2)) -- the canonical concrete
    subclass of the abstract PyTorch `Regularization` module.
    """

    def __init__(self, lambda_):
        assert lambda_ > 0
        self.lambda_ = float(lambda_)

    @staticmethod
    def _get_weight_list(named_params):
        # named_params: dict name -> array (mirrors model.named_parameters()).
        # TODO(synk): `param.requires_grad` has no JAX analog; all matching
        # 2-D / 4-D 'weight' params are included.
        return ((name, p) for name, p in named_params.items()
                if 'weight' in name and p.ndim in (2, 4))

    def print_weight_list(self, named_params):
        for name, p in self._get_weight_list(named_params):
            print(name, p.shape)

    def forward(self, named_params):
        weights = [w for _, w in self._get_weight_list(named_params)]
        if not weights:
            return jnp.float32(0.0)
        return self.lambda_ * _fused_l2(*weights)

    __call__ = forward


if __name__ == "__main__":
    key = jax.random.PRNGKey(0)
    k1, k2, k3, k4, k5 = jax.random.split(key, 5)

    # Deterministic synthetic "model" parameters.
    named_params = {
        "linear.weight": jax.random.normal(k1, (32, 64), jnp.float32) * 0.05,
        "linear.bias":   jax.random.normal(k2, (32,), jnp.float32),              # excluded (dim 1)
        "conv.weight":   jax.random.normal(k3, (4, 4, 3, 3), jnp.float32) * 0.1,  # OIHW, included
        "norm.weight":   jax.random.normal(k4, (16,), jnp.float32),               # excluded (dim 1)
        "proj.weight":   (jax.random.normal(k5, (48, 40), jnp.float32) * 0.02
                          ).astype(jnp.bfloat16),                                 # native-bf16 path
    }

    reg = Regularization(lambda_=0.01)
    out = jax.block_until_ready(reg(named_params))

    # Pure-JAX reference check (cast to f32 first, matching in-kernel math).
    ref = 0.01 * (jnp.sum(named_params["linear.weight"].astype(jnp.float32) ** 2)
                  + jnp.sum(named_params["conv.weight"].astype(jnp.float32) ** 2)
                  + jnp.sum(named_params["proj.weight"].astype(jnp.float32) ** 2))
    assert jnp.allclose(out, ref, rtol=1e-5, atol=1e-6), (out, ref)

    print("KERNEL_OK")
</pallas_src>

<mosaic_0001>
module attributes {stable_mosaic.version = 11 : i64} {
  func.func @_sumsq_kernel(%arg0: i32, %arg1: i32, %arg2: memref<8x36xf32, #tpu.memory_space<vmem>>, %arg3: memref<8x36xf32, #tpu.memory_space<vmem>>) attributes {dimension_semantics = [#tpu.dimension_semantics<parallel>, #tpu.dimension_semantics<arbitrary>], iteration_bounds = array<i64: 1, 1>, scalar_prefetch = 0 : i64, scratch_operands = 0 : i64, tpu.core_type = #tpu.core_type<tc>, window_params = [{transform_indices = @transform_0, window_bounds = array<i64: 8, 36>}, {transform_indices = @transform_1, window_bounds = array<i64: 8, 36>}]} {
    %c0_i32 = arith.constant 0 : i32
    %0 = arith.cmpi eq, %arg1, %c0_i32 : i32
    %1 = arith.extui %0 : i1 to i32
    %c0_i32_0 = arith.constant 0 : i32
    %2 = arith.cmpi ne, %1, %c0_i32_0 : i32
    scf.if %2 {
      %cst_7 = arith.constant 0.000000e+00 : f32
      %20 = vector.broadcast %cst_7 : f32 to vector<8x36xf32>
      %c0_8 = arith.constant 0 : index
      %c0_9 = arith.constant 0 : index
      %21 = vector.load %arg3[%c0_8, %c0_9] : memref<8x36xf32, #tpu.memory_space<vmem>>, vector<8x36xf32>
      tpu.vector_store %arg3[%c0_8, %c0_9], %20 {strides = array<i32>} : memref<8x36xf32, #tpu.memory_space<vmem>>, vector<8x36xf32>,
    } else {
    }
    %c0 = arith.constant 0 : index
    %c0_1 = arith.constant 0 : index
    %3 = vector.load %arg2[%c0, %c0_1] : memref<8x36xf32, #tpu.memory_space<vmem>>, vector<8x36xf32>
    %c1_i32 = arith.constant 1 : i32
    %4 = arith.muli %arg0, %c1_i32 : i32
    %5 = arith.addi %4, %arg1 : i32
    %c8_i32 = arith.constant 8 : i32
    %6 = arith.muli %5, %c8_i32 : i32
    %7 = tpu.iota {dimensions = array<i32: 0>} : vector<8x36xi32>
    %8 = vector.broadcast %6 : i32 to vector<8x36xi32>
    %9 = arith.addi %7, %8 : vector<8x36xi32>
    %c4_i32 = arith.constant 4 : i32
    %10 = vector.broadcast %c4_i32 : i32 to vector<8x36xi32>
    %11 = arith.cmpi slt, %9, %10 : vector<8x36xi32>
    %cst = arith.constant 0.000000e+00 : f32
    %12 = vector.broadcast %cst : f32 to vector<8x36xf32>
    %13 = arith.select %11, %3, %12 : vector<8x36xi1>, vector<8x36xf32>
    %14 = arith.mulf %13, %13 : vector<8x36xf32>
    %c0_2 = arith.constant 0 : index
    %c0_3 = arith.constant 0 : index
    %15 = vector.load %arg3[%c0_2, %c0_3] : memref<8x36xf32, #tpu.memory_space<vmem>>, vector<8x36xf32>
    %16 = vector.shape_cast %14 : vector<8x36xf32> to vector<1x8x36xf32>
    %cst_4 = arith.constant dense<0.000000e+00> : vector<8x36xf32>
    %17 = vector.multi_reduction <add>, %16, %cst_4 [0] : vector<1x8x36xf32> to vector<8x36xf32>
    %18 = arith.addf %15, %17 : vector<8x36xf32>
    %c0_5 = arith.constant 0 : index
    %c0_6 = arith.constant 0 : index
    %19 = vector.load %arg3[%c0_5, %c0_6] : memref<8x36xf32, #tpu.memory_space<vmem>>, vector<8x36xf32>
    tpu.vector_store %arg3[%c0_5, %c0_6], %18 {strides = array<i32>} : memref<8x36xf32, #tpu.memory_space<vmem>>, vector<8x36xf32>,
    return
  }
  func.func @transform_0(%arg0: i32, %arg1: i32) -> (i32, i32) {
    %c1_i32 = arith.constant 1 : i32
    %0 = arith.muli %arg0, %c1_i32 : i32
    %1 = arith.addi %0, %arg1 : i32
    %c0_i32 = arith.constant 0 : i32
    %c0_i32_0 = arith.constant 0 : i32
    return %1, %c0_i32 : i32, i32
  }
  func.func @transform_1(%arg0: i32, %arg1: i32) -> (i32, i32) {
    %c0_i32 = arith.constant 0 : i32
    %c0_i32_0 = arith.constant 0 : i32
    return %arg0, %c0_i32 : i32, i32
  }
}

module attributes {stable_mosaic.version = 11 : i64} {
  func.func @_sumsq_kernel(%arg0: i32, %arg1: i32, %arg2: memref<16x128xf32, #tpu.memory_space<vmem>>, %arg3: memref<8x128xf32, #tpu.memory_space<vmem>>) attributes {dimension_semantics = [#tpu.dimension_semantics<parallel>, #tpu.dimension_semantics<arbitrary>], iteration_bounds = array<i64: 1, 1>, scalar_prefetch = 0 : i64, scratch_operands = 0 : i64, tpu.core_type = #tpu.core_type<tc>, window_params = [{transform_indices = @transform_0, window_bounds = array<i64: 16, 128>}, {transform_indices = @transform_1, window_bounds = array<i64: 8, 128>}]} {
    %c0_i32 = arith.constant 0 : i32
    %0 = arith.cmpi eq, %arg1, %c0_i32 : i32
    %1 = arith.extui %0 : i1 to i32
    %c0_i32_0 = arith.constant 0 : i32
    %2 = arith.cmpi ne, %1, %c0_i32_0 : i32
    scf.if %2 {
      %cst_6 = arith.constant 0.000000e+00 : f32
      %10 = vector.broadcast %cst_6 : f32 to vector<8x128xf32>
      %c0_7 = arith.constant 0 : index
      %c0_8 = arith.constant 0 : index
      %11 = vector.load %arg3[%c0_7, %c0_8] : memref<8x128xf32, #tpu.memory_space<vmem>>, vector<8x128xf32>
      tpu.vector_store %arg3[%c0_7, %c0_8], %10 {strides = array<i32>} : memref<8x128xf32, #tpu.memory_space<vmem>>, vector<8x128xf32>,
    } else {
    }
    %c0 = arith.constant 0 : index
    %c0_1 = arith.constant 0 : index
    %3 = vector.load %arg2[%c0, %c0_1] : memref<16x128xf32, #tpu.memory_space<vmem>>, vector<16x128xf32>
    %4 = arith.mulf %3, %3 : vector<16x128xf32>
    %c0_2 = arith.constant 0 : index
    %c0_3 = arith.constant 0 : index
    %5 = vector.load %arg3[%c0_2, %c0_3] : memref<8x128xf32, #tpu.memory_space<vmem>>, vector<8x128xf32>
    %6 = vector.shape_cast %4 : vector<16x128xf32> to vector<2x8x128xf32>
    %cst = arith.constant dense<0.000000e+00> : vector<8x128xf32>
    %7 = vector.multi_reduction <add>, %6, %cst [0] : vector<2x8x128xf32> to vector<8x128xf32>
    %8 = arith.addf %5, %7 : vector<8x128xf32>
    %c0_4 = arith.constant 0 : index
    %c0_5 = arith.constant 0 : index
    %9 = vector.load %arg3[%c0_4, %c0_5] : memref<8x128xf32, #tpu.memory_space<vmem>>, vector<8x128xf32>
    tpu.vector_store %arg3[%c0_4, %c0_5], %8 {strides = array<i32>} : memref<8x128xf32, #tpu.memory_space<vmem>>, vector<8x128xf32>,
    return
  }
  func.func @transform_0(%arg0: i32, %arg1: i32) -> (i32, i32) {
    %c1_i32 = arith.constant 1 : i32
    %0 = arith.muli %arg0, %c1_i32 : i32
    %1 = arith.addi %0, %arg1 : i32
    %c0_i32 = arith.constant 0 : i32
    %c0_i32_0 = arith.constant 0 : i32
    return %1, %c0_i32 : i32, i32
  }
  func.func @transform_1(%arg0: i32, %arg1: i32) -> (i32, i32) {
    %c0_i32 = arith.constant 0 : i32
    %c0_i32_0 = arith.constant 0 : i32
    return %arg0, %c0_i32 : i32, i32
  }
}

module attributes {stable_mosaic.version = 11 : i64} {
  func.func @_sumsq_kernel(%arg0: i32, %arg1: i32, %arg2: memref<16x128xbf16, #tpu.memory_space<vmem>>, %arg3: memref<8x128xf32, #tpu.memory_space<vmem>>) attributes {dimension_semantics = [#tpu.dimension_semantics<parallel>, #tpu.dimension_semantics<arbitrary>], iteration_bounds = array<i64: 1, 1>, scalar_prefetch = 0 : i64, scratch_operands = 0 : i64, tpu.core_type = #tpu.core_type<tc>, window_params = [{transform_indices = @transform_0, window_bounds = array<i64: 16, 128>}, {transform_indices = @transform_1, window_bounds = array<i64: 8, 128>}]} {
    %c0_i32 = arith.constant 0 : i32
    %0 = arith.cmpi eq, %arg1, %c0_i32 : i32
    %1 = arith.extui %0 : i1 to i32
    %c0_i32_0 = arith.constant 0 : i32
    %2 = arith.cmpi ne, %1, %c0_i32_0 : i32
    scf.if %2 {
      %cst_7 = arith.constant 0.000000e+00 : f32
      %21 = vector.broadcast %cst_7 : f32 to vector<8x128xf32>
      %c0_8 = arith.constant 0 : index
      %c0_9 = arith.constant 0 : index
      %22 = vector.load %arg3[%c0_8, %c0_9] : memref<8x128xf32, #tpu.memory_space<vmem>>, vector<8x128xf32>
      tpu.vector_store %arg3[%c0_8, %c0_9], %21 {strides = array<i32>} : memref<8x128xf32, #tpu.memory_space<vmem>>, vector<8x128xf32>,
    } else {
    }
    %c0 = arith.constant 0 : index
    %c0_1 = arith.constant 0 : index
    %3 = vector.load %arg2[%c0, %c0_1] : memref<16x128xbf16, #tpu.memory_space<vmem>>, vector<16x128xbf16>
    %4 = arith.extf %3 : vector<16x128xbf16> to vector<16x128xf32>
    %c1_i32 = arith.constant 1 : i32
    %5 = arith.muli %arg0, %c1_i32 : i32
    %6 = arith.addi %5, %arg1 : i32
    %c16_i32 = arith.constant 16 : i32
    %7 = arith.muli %6, %c16_i32 : i32
    %8 = tpu.iota {dimensions = array<i32: 0>} : vector<16x128xi32>
    %9 = vector.broadcast %7 : i32 to vector<16x128xi32>
    %10 = arith.addi %8, %9 : vector<16x128xi32>
    %c15_i32 = arith.constant 15 : i32
    %11 = vector.broadcast %c15_i32 : i32 to vector<16x128xi32>
    %12 = arith.cmpi slt, %10, %11 : vector<16x128xi32>
    %cst = arith.constant 0.000000e+00 : f32
    %13 = vector.broadcast %cst : f32 to vector<16x128xf32>
    %14 = arith.select %12, %4, %13 : vector<16x128xi1>, vector<16x128xf32>
    %15 = arith.mulf %14, %14 : vector<16x128xf32>
    %c0_2 = arith.constant 0 : index
    %c0_3 = arith.constant 0 : index
    %16 = vector.load %arg3[%c0_2, %c0_3] : memref<8x128xf32, #tpu.memory_space<vmem>>, vector<8x128xf32>
    %17 = vector.shape_cast %15 : vector<16x128xf32> to vector<2x8x128xf32>
    %cst_4 = arith.constant dense<0.000000e+00> : vector<8x128xf32>
    %18 = vector.multi_reduction <add>, %17, %cst_4 [0] : vector<2x8x128xf32> to vector<8x128xf32>
    %19 = arith.addf %16, %18 : vector<8x128xf32>
    %c0_5 = arith.constant 0 : index
    %c0_6 = arith.constant 0 : index
    %20 = vector.load %arg3[%c0_5, %c0_6] : memref<8x128xf32, #tpu.memory_space<vmem>>, vector<8x128xf32>
    tpu.vector_store %arg3[%c0_5, %c0_6], %19 {strides = array<i32>} : memref<8x128xf32, #tpu.memory_space<vmem>>, vector<8x128xf32>,
    return
  }
  func.func @transform_0(%arg0: i32, %arg1: i32) -> (i32, i32) {
    %c1_i32 = arith.constant 1 : i32
    %0 = arith.muli %arg0, %c1_i32 : i32
    %1 = arith.addi %0, %arg1 : i32
    %c0_i32 = arith.constant 0 : i32
    %c0_i32_0 = arith.constant 0 : i32
    return %1, %c0_i32 : i32, i32
  }
  func.func @transform_1(%arg0: i32, %arg1: i32) -> (i32, i32) {
    %c0_i32 = arith.constant 0 : i32
    %c0_i32_0 = arith.constant 0 : i32
    return %arg0, %c0_i32 : i32, i32
  }
}

</mosaic_0001>

<bundles_post_ra>
// kernel: _fused_l2.4
= control target key start
LH: loop header
LB: loop body
LE: loop exit
PB: predicated region body
PF: predicated region fallthrough
CT: control target
= control target key end

     0   :  { %vm44_vm0 = vcmask 293888   ;;  %v73_v0 = vmov 0.0   ;;  %s96_s0 = inlined_call_operand.vmem [shape: f32[4,36], index: 0, kind: input, shape index: {}]   ;;  %s97_s1 = inlined_call_operand.vmem [shape: f32[8,36], index: 1, kind: output, shape index: {}]  }
   0x1   :  { %45 = vst.msk [vmem:[%s97_s1] sm:$0xff] %vm44_vm0, %v73_v0  ;;  %v71_v1 = vld [vmem:[%s96_s0] sm:$0xf] }
   0x2   :  { %v55_v2 = vmul.f32 %v71_v1, %v71_v1 }
   0x8   :  { %v56_v3 = vld [vmem:[%s97_s1] sm:$0xff] }
   0x9   :  { %v58_v4 = vadd.f32 %v56_v3, %v55_v2 }
   0xb   :  { %60 = vst.msk [vmem:[%s97_s1] sm:$0xff] %vm44_vm0, %v58_v4 }

// kernel: _fused_l2.3
= control target key start
LH: loop header
LB: loop body
LE: loop exit
PB: predicated region body
PF: predicated region fallthrough
CT: control target
= control target key end

     0   :  { %s73_s0 = inlined_call_operand.vmem [shape: f32[16,128], index: 0, kind: input, shape index: {}]   ;;  %s74_s1 = inlined_call_operand.vmem [shape: f32[8,128], index: 1, kind: output, shape index: {}]  }
   0x1   :  { %v35_v0 = vld [vmem:[%s73_s0] sm:$0xff]  ;;  %v36_v1 = vld [vmem:[%s73_s0 + $0x8] sm:$0xff] }
   0x2   :  { %v37_v2 = vmul.f32 %v35_v0, %v35_v0  ;;  %v38_v3 = vmul.f32 %v36_v1, %v36_v1 }
   0x4   :  { %v40_v4 = vadd.f32 %v38_v3, %v37_v2 }
   0x6   :  { %42 = vst [vmem:[%s74_s1] sm:$0xff] %v40_v4 }

// kernel: _fused_l2.5
= control target key start
LH: loop header
LB: loop body
LE: loop exit
PB: predicated region body
PF: predicated region fallthrough
CT: control target
= control target key end

     0   :  { %v41_v0 = vlaneseq  ;;  %s88_s0 = inlined_call_operand.vmem [shape: bf16[15,128], index: 0, kind: input, shape index: {}]   ;;  %s89_s1 = inlined_call_operand.vmem [shape: f32[8,128], index: 1, kind: output, shape index: {}]  }
   0x1   :  { %v68_v1 = vld [vmem:[%s88_s0] sm:$0xff]  }
   0x2   :  { %v69_v2 = vunpack.c.l.bf16 %v68_v1  ;;  %v42_v3 = vshrl.u32 %v41_v0, 7  ;;  %v70_v4 = vunpack.c.h.bf16 %v68_v1 }
   0x4   :  { %v43_v5 = vadd.s32 8, %v42_v3  ;;  %v51_v6 = vmul.f32 %v69_v2, %v69_v2 }
   0x6   :  { %vm48_vm0 = vcmp.lt.s32.totalorder %v43_v5, 15 }
   0x7   :  { %v50_v7 = vsel %vm48_vm0, %v70_v4, 0.0 }
   0x8   :  { %v52_v8 = vmul.f32 %v50_v7, %v50_v7 }
   0xa   :  { %v54_v9 = vadd.f32 %v52_v8, %v51_v6 }
   0xc   :  { %56 = vst [vmem:[%s89_s1] sm:$0xff] %v54_v9 }

</bundles_post_ra>
